<compile_context>
chip_gen: v5e
topology: v5e:2x2
jax: 0.10.0
libtpu: 0.0.40
codegen_flags: <defaults>
</compile_context>

<pallas_src>
import functools
from types import SimpleNamespace

import jax
import jax.numpy as jnp
from jax.experimental import pallas as pl
from jax.experimental.pallas import tpu as pltpu


# ----------------------------- Pallas kernels ------------------------------

def _backbone_pool_kernel(x_ref, w_ref, b_ref, pm_ref, o_ref):
    """Fused 1x1 conv (ImageNet norm + 1/pool folded into w,b) + ReLU + avg-pool.

    x_ref:  (3, H*W)      one image, natural NCHW layout (lane dim = H*W)
    w_ref:  (D, 3)        w' = (w/std)/P
    b_ref:  (D, 1)        b' = (b - (mean/std)@w)/P
    pm_ref: (H*W, OH*OW)  0/1 pool-window membership (average folded into w,b)
    o_ref:  (D, OH*OW)
    """
    x = x_ref[...]
    w = w_ref[...]
    b = b_ref[...]
    # Depth-3 channel contraction as 3 VPU FMAs (no MXU round-trip for K=3).
    feat = jnp.maximum(
        w[:, 0:1] * x[0:1, :] + w[:, 1:2] * x[1:2, :] + w[:, 2:3] * x[2:3, :] + b,
        0.0)                                                        # (D, H*W)
    # Window sum on the MXU (free slot vs. the VPU work above).
    o_ref[...] = jnp.dot(feat, pm_ref[...], preferred_element_type=jnp.float32)


def backbone_pooled(images, w_eff_t, b_eff_t, pool_mat, d, oh, ow):
    """images: (BT, 3, H*W) f32 (free view of the input tensor, no relayout).

    Returns (BT, D, OH*OW) float32. Grid = one image per step (software
    pipelined, parallel across TensorCores on v7x)."""
    BT, _, HW = images.shape
    OHOW = oh * ow
    return pl.pallas_call(
        _backbone_pool_kernel,
        out_shape=jax.ShapeDtypeStruct((BT, d, OHOW), jnp.float32),
        grid=(BT,),
        in_specs=[
            pl.BlockSpec((None, 3, HW), lambda i: (i, 0, 0)),
            pl.BlockSpec((d, 3), lambda i: (0, 0)),
            pl.BlockSpec((d, 1), lambda i: (0, 0)),
            pl.BlockSpec((HW, OHOW), lambda i: (0, 0)),
        ],
        out_specs=pl.BlockSpec((None, d, OHOW), lambda i: (i, 0, 0)),
        compiler_params=pltpu.CompilerParams(
            dimension_semantics=("parallel",),
            vmem_limit_bytes=48 * 1024 * 1024),
    )(images, w_eff_t, b_eff_t, pool_mat)


def _embed_gap_kernel(x_ref, seg_ref, w_ref, b_ref, o_ref):
    """Fused images_embedding (Linear + ReLU) + masked GAP over valid boxes.

    x_ref:   (RT, Fp)   bf16 box features (RT = groups_per_step * MAX_N rows)
    seg_ref: (GPS, RT)  f32 block-diagonal weights (1/N_b for valid boxes)
    w_ref:   (Fp, Hp)   bf16    b_ref: (1, Hp) f32    o_ref: (GPS, Hp) f32
    """
    y = jnp.dot(x_ref[...], w_ref[...], preferred_element_type=jnp.float32)
    y = jnp.maximum(y + b_ref[...], 0.0)                            # (RT, Hp)
    o_ref[...] = jnp.dot(seg_ref[...], y, preferred_element_type=jnp.float32)


def embed_and_gap(box_rows, wrow, w_emb, b_emb, max_n, hd, groups_per_step=8):
    """box_rows: (B*T*MAX_N, F) f32, wrow: (B*T*MAX_N,) per-row GAP weight.

    One big row-tiled matmul (F, hd zero-padded to 128 -> lane-dense output,
    MXU-granular K/N) in bf16 with f32 accumulation; the masked GAP is a
    second small segment-sum matmul. Returns (B*T, hd) f32."""
    R, F = box_rows.shape
    n_groups = R // max_n
    gps = groups_per_step                       # raise at real sizes (keep %8 == 0)
    Fp = ((F + 127) // 128) * 128
    Hp = ((hd + 127) // 128) * 128
    n_groups_pad = ((n_groups + gps - 1) // gps) * gps
    Rp = n_groups_pad * max_n
    S = n_groups_pad // gps
    RT = gps * max_n

    x = jnp.pad(box_rows, ((0, Rp - R), (0, Fp - F))).astype(jnp.bfloat16)
    w = jnp.pad(w_emb, ((0, Fp - F), (0, Hp - hd))).astype(jnp.bfloat16)
    b = jnp.pad(b_emb, ((0, 0), (0, Hp - hd))).astype(jnp.float32)

    # Block-diagonal per-step segment matrix with the 1/N_b weight folded in
    # (padded rows get weight 0, so zero-padding is exact).
    wrow_p = jnp.pad(wrow, (0, Rp - R))
    wrow_grp = wrow_p.reshape(S, gps, max_n)
    eyeg = jnp.eye(gps, dtype=jnp.float32)
    seg = (eyeg[None, :, :, None] * wrow_grp[:, None, :, :]).reshape(S, gps, RT)

    out = pl.pallas_call(
        _embed_gap_kernel,
        out_shape=jax.ShapeDtypeStruct((n_groups_pad, Hp), jnp.float32),
        grid=(S,),
        in_specs=[
            pl.BlockSpec((RT, Fp), lambda s: (s, 0)),
            pl.BlockSpec((None, gps, RT), lambda s: (s, 0, 0)),
            pl.BlockSpec((Fp, Hp), lambda s: (0, 0)),
            pl.BlockSpec((1, Hp), lambda s: (0, 0)),
        ],
        out_specs=pl.BlockSpec((gps, Hp), lambda s: (s, 0)),
        compiler_params=pltpu.CompilerParams(
            dimension_semantics=("parallel",),
            vmem_limit_bytes=48 * 1024 * 1024),
    )(x, seg, w, b)
    return out[:n_groups, :hd]


# ------------------------------- JAX glue -----------------------------------

def _bilinear_axis_weights(lo, hi, K, size):
    """Per-box bilinear sampling weights along one axis: (..., K, size)."""
    t = (jnp.arange(K, dtype=jnp.float32) + 0.5) / K
    pos = (lo[..., None] + (hi - lo)[..., None] * t) * (size - 1)
    i0 = jnp.clip(jnp.floor(pos), 0, size - 2).astype(jnp.int32)
    frac = pos - i0.astype(jnp.float32)
    oh0 = jax.nn.one_hot(i0, size, dtype=jnp.float32)
    oh1 = jax.nn.one_hot(i0 + 1, size, dtype=jnp.float32)
    return (1.0 - frac)[..., None] * oh0 + frac[..., None] * oh1


def forward(params, images_in, boxes_in, bboxes_num_in, cfg):
    B, T = images_in.shape[0], images_in.shape[1]
    H, W = cfg.image_size
    OH, OW = cfg.out_size
    MAX_N = cfg.num_boxes
    D = cfg.emb_features
    K = cfg.crop_size[0]
    ph, pw = H // OH, W // OW
    P = ph * pw
    BT = B * T
    Hd = cfg.hidden_size

    # prep_images + 1/pool folded into the backbone weights (ReLU is positively
    # homogeneous): w' = (w/std)/P,  b' = (b - (mean/std)@w)/P.
    mean = jnp.array([0.485, 0.456, 0.406], jnp.float32)
    std = jnp.array([0.229, 0.224, 0.225], jnp.float32)
    w_eff = (params["w_bb"] / std[:, None]) / P                              # (3, D)
    b_eff = (params["b_bb"] - (mean / std)[None, :] @ params["w_bb"]) / P    # (1, D)

    # 0/1 pool-window membership matrix (the 1/P average is folded into w,b).
    oh_of_h = jnp.arange(H) // ph
    ow_of_w = jnp.arange(W) // pw
    ohow_of_hw = (oh_of_h[:, None] * OW + ow_of_w[None, :]).reshape(H * W)
    pool_mat = jax.nn.one_hot(ohow_of_hw, OH * OW, dtype=jnp.float32)        # (HW, OHOW)

    # TODO(synk): pretrained backbone (MyInception_v3 / MyVGG / MyRes18) is an
    # external module; stand-in = 1x1 conv + ReLU + avg-pool to (OH, OW), fused
    # in one Pallas kernel reading the image in its natural layout.
    x = images_in.reshape(BT, 3, H * W)            # free view, no HBM relayout
    fmaps = backbone_pooled(x, w_eff.T, b_eff.T, pool_mat, D, OH, OW)        # (BT,D,OHOW)
    fmaps = fmaps.reshape(BT, D, OH, OW)           # free split of trailing dim

    # RoIAlign as bilinear-weight contractions (gather-free), bf16 / f32 acc.
    # TODO(synk): stand-in for torchvision RoIAlign (no sampling_ratio
    # sub-sample averaging; size-2 edge clamp).  At production OH/OW/D, fuse
    # this contraction into the embedding kernel instead of staging crops.
    boxes = boxes_in.reshape(BT, MAX_N, 4)
    wy = _bilinear_axis_weights(boxes[..., 1], boxes[..., 3], K, OH)         # (BT,N,K,OH)
    wx = _bilinear_axis_weights(boxes[..., 0], boxes[..., 2], K, OW)         # (BT,N,K,OW)
    crops = jnp.einsum('bnki,bnlj,bdij->bndkl',
                       wy.astype(jnp.bfloat16), wx.astype(jnp.bfloat16),
                       fmaps.astype(jnp.bfloat16),
                       preferred_element_type=jnp.float32)                   # (BT,N,D,K,K)
    box_rows = crops.reshape(BT * MAX_N, D * K * K)

    # Per-row GAP weight: 1/N_b for valid boxes (frame-0 count, per reference).
    bboxes_num = bboxes_num_in[:, 0]                                         # (B,)
    cnt = jnp.maximum(bboxes_num.astype(jnp.float32), 1.0)                   # guard N==0
    valid = (jnp.arange(MAX_N)[None, :] < bboxes_num[:, None]).astype(jnp.float32)
    w_box = valid / cnt[:, None]                                             # (B, MAX_N)
    wrow = jnp.broadcast_to(w_box[:, None, :], (B, T, MAX_N)).reshape(BT * MAX_N)

    # Fused images_embedding (Linear + ReLU) + masked GAP over boxes (Pallas).
    x_frame = embed_and_gap(box_rows, wrow, params["w_emb"], params["b_emb"],
                            MAX_N, Hd)                                       # (BT, Hd)
    x_feat = x_frame.reshape(B, T, Hd)

    # TODO(synk): Spatial_Temporal_Group_Residual_Module definition is not
    # provided; deterministic stand-in doubles the feature dim per temporal
    # layer (concat with a temporal cumulative mean) so the final width matches
    # hidden_size * 2 ** num_temporal_layers expected by fc_activities.
    t_norm = jnp.arange(1, T + 1, dtype=jnp.float32)[None, :, None]
    for _ in range(cfg.num_temporal_layers):
        cum = jnp.cumsum(x_feat, axis=1) / t_norm
        x_feat = jnp.concatenate([x_feat, cum], axis=-1)
    x_last = x_feat[:, -1, :]                                                # (B, hidden*2**L)

    # fc_activities: M=B, N=num_activities is below MXU/lane granularity; XLA.
    scores = x_last @ params["w_fc"] + params["b_fc"]
    return scores.reshape(-1, cfg.num_activities)


# --------------------------------- main --------------------------------------

if __name__ == "__main__":
    cfg = SimpleNamespace(
        num_frames=3,
        num_boxes=4,
        emb_features=4,
        crop_size=(5, 5),
        image_size=(16, 16),
        out_size=(8, 8),
        hidden_size=32,
        num_layers=1,
        num_temporal_layers=2,
        num_activities=5,
        num_features_boxes=32,
        num_features_relation=32,
        num_features_gcn=32,
    )

    B, T = 2, cfg.num_frames
    H, W = cfg.image_size
    MAX_N = cfg.num_boxes
    D = cfg.emb_features
    K = cfg.crop_size[0]

    key = jax.random.PRNGKey(0)
    k_img, k_box, k_num, k1, k2, k3, k4, k5, k6 = jax.random.split(key, 9)

    # Deterministic synthetic parameters (shapes implied by the module __init__).
    params = {
        "w_bb":  0.05 * jax.random.normal(k1, (3, D), jnp.float32),
        "b_bb":  jnp.zeros((1, D), jnp.float32),
        "w_emb": 0.05 * jax.random.normal(k2, (D * K * K, cfg.hidden_size), jnp.float32),
        "b_emb": 0.01 * jax.random.normal(k3, (1, cfg.hidden_size), jnp.float32),
        "w_fc":  0.05 * jax.random.normal(
            k4, (cfg.hidden_size * 2 ** cfg.num_temporal_layers, cfg.num_activities),
            jnp.float32),
        "b_fc":  0.01 * jax.random.normal(k5, (1, cfg.num_activities), jnp.float32),
    }

    # Inputs: images (B,T,3,H,W), boxes (B,T,MAX_N,4) normalized, counts (B,T).
    images_in = jax.random.uniform(k_img, (B, T, 3, H, W), jnp.float32)
    xy1 = jax.random.uniform(k_box, (B, T, MAX_N, 2), jnp.float32, 0.0, 0.5)
    wh = jax.random.uniform(k6, (B, T, MAX_N, 2), jnp.float32, 0.2, 0.5)
    xy2 = jnp.clip(xy1 + wh, 0.0, 1.0)
    boxes_in = jnp.concatenate([xy1, xy2], axis=-1)
    bboxes_num_in = jax.random.randint(k_num, (B, T), 1, MAX_N + 1, jnp.int32)

    fwd = jax.jit(functools.partial(forward, cfg=cfg))
    out = fwd(params, images_in, boxes_in, bboxes_num_in)
    jax.block_until_ready(out)
    assert out.shape == (B, cfg.num_activities)
    print("KERNEL_OK")
</pallas_src>

<mosaic_0001>
module attributes {stable_mosaic.version = 11 : i64} {
  func.func @_backbone_pool_kernel(%arg0: i32, %arg1: memref<1x3x256xf32, #tpu.memory_space<vmem>>, %arg2: memref<4x3xf32, #tpu.memory_space<vmem>>, %arg3: memref<4x1xf32, #tpu.memory_space<vmem>>, %arg4: memref<256x64xf32, #tpu.memory_space<vmem>>, %arg5: memref<1x4x64xf32, #tpu.memory_space<vmem>>) attributes {dimension_semantics = [#tpu.dimension_semantics<parallel>], iteration_bounds = array<i64: 6>, scalar_prefetch = 0 : i64, scratch_operands = 0 : i64, tpu.core_type = #tpu.core_type<tc>, window_params = [{transform_indices = @transform_0, window_bounds = array<i64: 1, 3, 256>}, {pipeline_mode = #tpu.pipeline_mode<synchronous>, transform_indices = @transform_1, window_bounds = array<i64: 4, 3>}, {pipeline_mode = #tpu.pipeline_mode<synchronous>, transform_indices = @transform_2, window_bounds = array<i64: 4, 1>}, {pipeline_mode = #tpu.pipeline_mode<synchronous>, transform_indices = @transform_3, window_bounds = array<i64: 256, 64>}, {transform_indices = @transform_4, window_bounds = array<i64: 1, 4, 64>}]} {
    %c0 = arith.constant 0 : index
    %c0_0 = arith.constant 0 : index
    %c0_1 = arith.constant 0 : index
    %0 = vector.load %arg1[%c0, %c0_0, %c0_1] : memref<1x3x256xf32, #tpu.memory_space<vmem>>, vector<1x3x256xf32>
    %1 = vector.shape_cast %0 : vector<1x3x256xf32> to vector<3x256xf32>
    %c0_2 = arith.constant 0 : index
    %c0_3 = arith.constant 0 : index
    %2 = vector.load %arg2[%c0_2, %c0_3] : memref<4x3xf32, #tpu.memory_space<vmem>>, vector<4x3xf32>
    %c0_4 = arith.constant 0 : index
    %c0_5 = arith.constant 0 : index
    %3 = vector.load %arg3[%c0_4, %c0_5] : memref<4x1xf32, #tpu.memory_space<vmem>>, vector<4x1xf32>
    %4 = vector.extract_strided_slice %2 {offsets = [0, 0], sizes = [4, 1], strides = [1, 1]} : vector<4x3xf32> to vector<4x1xf32>
    %5 = vector.extract_strided_slice %1 {offsets = [0, 0], sizes = [1, 256], strides = [1, 1]} : vector<3x256xf32> to vector<1x256xf32>
    %6 = vector.broadcast %4 : vector<4x1xf32> to vector<4x256xf32>
    %7 = vector.broadcast %5 : vector<1x256xf32> to vector<4x256xf32>
    %8 = arith.mulf %6, %7 : vector<4x256xf32>
    %9 = vector.extract_strided_slice %2 {offsets = [0, 1], sizes = [4, 1], strides = [1, 1]} : vector<4x3xf32> to vector<4x1xf32>
    %10 = vector.extract_strided_slice %1 {offsets = [1, 0], sizes = [1, 256], strides = [1, 1]} : vector<3x256xf32> to vector<1x256xf32>
    %11 = vector.broadcast %9 : vector<4x1xf32> to vector<4x256xf32>
    %12 = vector.broadcast %10 : vector<1x256xf32> to vector<4x256xf32>
    %13 = arith.mulf %11, %12 : vector<4x256xf32>
    %14 = arith.addf %8, %13 : vector<4x256xf32>
    %15 = vector.extract_strided_slice %2 {offsets = [0, 2], sizes = [4, 1], strides = [1, 1]} : vector<4x3xf32> to vector<4x1xf32>
    %16 = vector.extract_strided_slice %1 {offsets = [2, 0], sizes = [1, 256], strides = [1, 1]} : vector<3x256xf32> to vector<1x256xf32>
    %17 = vector.broadcast %15 : vector<4x1xf32> to vector<4x256xf32>
    %18 = vector.broadcast %16 : vector<1x256xf32> to vector<4x256xf32>
    %19 = arith.mulf %17, %18 : vector<4x256xf32>
    %20 = arith.addf %14, %19 : vector<4x256xf32>
    %21 = vector.broadcast %3 : vector<4x1xf32> to vector<4x256xf32>
    %22 = arith.addf %20, %21 : vector<4x256xf32>
    %cst = arith.constant 0.000000e+00 : f32
    %23 = vector.broadcast %cst : f32 to vector<4x256xf32>
    %24 = arith.maximumf %22, %23 : vector<4x256xf32>
    %c0_6 = arith.constant 0 : index
    %c0_7 = arith.constant 0 : index
    %25 = vector.load %arg4[%c0_6, %c0_7] : memref<256x64xf32, #tpu.memory_space<vmem>>, vector<256x64xf32>
    %cst_8 = arith.constant dense<0.000000e+00> : vector<4x64xf32>
    %26 = tpu.matmul %24, %25, %cst_8 {dimension_numbers = #tpu.dot_dimension_numbers<[1], [0], [0], [1], [0, 0, 1, 1], [], []>} : vector<4x256xf32>, vector<256x64xf32>, vector<4x64xf32> -> vector<4x64xf32>
    %c0_9 = arith.constant 0 : index
    %c0_10 = arith.constant 0 : index
    %c0_11 = arith.constant 0 : index
    %27 = vector.load %arg5[%c0_9, %c0_10, %c0_11] : memref<1x4x64xf32, #tpu.memory_space<vmem>>, vector<1x4x64xf32>
    %28 = vector.shape_cast %27 : vector<1x4x64xf32> to vector<4x64xf32>
    %29 = vector.shape_cast %26 : vector<4x64xf32> to vector<1x4x64xf32>
    tpu.vector_store %arg5[%c0_9, %c0_10, %c0_11], %29 {strides = array<i32>} : memref<1x4x64xf32, #tpu.memory_space<vmem>>, vector<1x4x64xf32>,
    return
  }
  func.func @transform_0(%arg0: i32) -> (i32, i32, i32) {
    %c0_i32 = arith.constant 0 : i32
    %c0_i32_0 = arith.constant 0 : i32
    %c0_i32_1 = arith.constant 0 : i32
    return %arg0, %c0_i32, %c0_i32_0 : i32, i32, i32
  }
  func.func @transform_1(%arg0: i32) -> (i32, i32) {
    %c0_i32 = arith.constant 0 : i32
    %c0_i32_0 = arith.constant 0 : i32
    %c0_i32_1 = arith.constant 0 : i32
    return %c0_i32, %c0_i32_0 : i32, i32
  }
  func.func @transform_2(%arg0: i32) -> (i32, i32) {
    %c0_i32 = arith.constant 0 : i32
    %c0_i32_0 = arith.constant 0 : i32
    %c0_i32_1 = arith.constant 0 : i32
    return %c0_i32, %c0_i32_0 : i32, i32
  }
  func.func @transform_3(%arg0: i32) -> (i32, i32) {
    %c0_i32 = arith.constant 0 : i32
    %c0_i32_0 = arith.constant 0 : i32
    %c0_i32_1 = arith.constant 0 : i32
    return %c0_i32, %c0_i32_0 : i32, i32
  }
  func.func @transform_4(%arg0: i32) -> (i32, i32, i32) {
    %c0_i32 = arith.constant 0 : i32
    %c0_i32_0 = arith.constant 0 : i32
    %c0_i32_1 = arith.constant 0 : i32
    return %arg0, %c0_i32, %c0_i32_0 : i32, i32, i32
  }
}

module attributes {stable_mosaic.version = 11 : i64} {
  func.func @_embed_gap_kernel(%arg0: i32, %arg1: memref<32x128xbf16, #tpu.memory_space<vmem>>, %arg2: memref<1x8x32xf32, #tpu.memory_space<vmem>>, %arg3: memref<128x128xbf16, #tpu.memory_space<vmem>>, %arg4: memref<1x128xf32, #tpu.memory_space<vmem>>, %arg5: memref<8x128xf32, #tpu.memory_space<vmem>>) attributes {dimension_semantics = [#tpu.dimension_semantics<parallel>], iteration_bounds = array<i64: 1>, scalar_prefetch = 0 : i64, scratch_operands = 0 : i64, tpu.core_type = #tpu.core_type<tc>, window_params = [{transform_indices = @transform_0, window_bounds = array<i64: 32, 128>}, {transform_indices = @transform_1, window_bounds = array<i64: 1, 8, 32>}, {pipeline_mode = #tpu.pipeline_mode<synchronous>, transform_indices = @transform_2, window_bounds = array<i64: 128, 128>}, {pipeline_mode = #tpu.pipeline_mode<synchronous>, transform_indices = @transform_3, window_bounds = array<i64: 1, 128>}, {transform_indices = @transform_4, window_bounds = array<i64: 8, 128>}]} {
    %c0 = arith.constant 0 : index
    %c0_0 = arith.constant 0 : index
    %0 = vector.load %arg1[%c0, %c0_0] : memref<32x128xbf16, #tpu.memory_space<vmem>>, vector<32x128xbf16>
    %c0_1 = arith.constant 0 : index
    %c0_2 = arith.constant 0 : index
    %1 = vector.load %arg3[%c0_1, %c0_2] : memref<128x128xbf16, #tpu.memory_space<vmem>>, vector<128x128xbf16>
    %cst = arith.constant dense<0.000000e+00> : vector<32x128xf32>
    %2 = tpu.matmul %0, %1, %cst {dimension_numbers = #tpu.dot_dimension_numbers<[1], [0], [0], [1], [0, 0, 1, 1], [], []>} : vector<32x128xbf16>, vector<128x128xbf16>, vector<32x128xf32> -> vector<32x128xf32>
    %c0_3 = arith.constant 0 : index
    %c0_4 = arith.constant 0 : index
    %3 = vector.load %arg4[%c0_3, %c0_4] : memref<1x128xf32, #tpu.memory_space<vmem>>, vector<1x128xf32>
    %4 = vector.broadcast %3 : vector<1x128xf32> to vector<32x128xf32>
    %5 = arith.addf %2, %4 : vector<32x128xf32>
    %cst_5 = arith.constant 0.000000e+00 : f32
    %6 = vector.broadcast %cst_5 : f32 to vector<32x128xf32>
    %7 = arith.maximumf %5, %6 : vector<32x128xf32>
    %c0_6 = arith.constant 0 : index
    %c0_7 = arith.constant 0 : index
    %c0_8 = arith.constant 0 : index
    %8 = vector.load %arg2[%c0_6, %c0_7, %c0_8] : memref<1x8x32xf32, #tpu.memory_space<vmem>>, vector<1x8x32xf32>
    %9 = vector.shape_cast %8 : vector<1x8x32xf32> to vector<8x32xf32>
    %cst_9 = arith.constant dense<0.000000e+00> : vector<8x128xf32>
    %10 = tpu.matmul %9, %7, %cst_9 {dimension_numbers = #tpu.dot_dimension_numbers<[1], [0], [0], [1], [0, 0, 1, 1], [], []>} : vector<8x32xf32>, vector<32x128xf32>, vector<8x128xf32> -> vector<8x128xf32>
    %c0_10 = arith.constant 0 : index
    %c0_11 = arith.constant 0 : index
    %11 = vector.load %arg5[%c0_10, %c0_11] : memref<8x128xf32, #tpu.memory_space<vmem>>, vector<8x128xf32>
    tpu.vector_store %arg5[%c0_10, %c0_11], %10 {strides = array<i32>} : memref<8x128xf32, #tpu.memory_space<vmem>>, vector<8x128xf32>,
    return
  }
  func.func @transform_0(%arg0: i32) -> (i32, i32) {
    %c0_i32 = arith.constant 0 : i32
    %c0_i32_0 = arith.constant 0 : i32
    return %arg0, %c0_i32 : i32, i32
  }
  func.func @transform_1(%arg0: i32) -> (i32, i32, i32) {
    %c0_i32 = arith.constant 0 : i32
    %c0_i32_0 = arith.constant 0 : i32
    %c0_i32_1 = arith.constant 0 : i32
    return %arg0, %c0_i32, %c0_i32_0 : i32, i32, i32
  }
  func.func @transform_2(%arg0: i32) -> (i32, i32) {
    %c0_i32 = arith.constant 0 : i32
    %c0_i32_0 = arith.constant 0 : i32
    %c0_i32_1 = arith.constant 0 : i32
    return %c0_i32, %c0_i32_0 : i32, i32
  }
  func.func @transform_3(%arg0: i32) -> (i32, i32) {
    %c0_i32 = arith.constant 0 : i32
    %c0_i32_0 = arith.constant 0 : i32
    %c0_i32_1 = arith.constant 0 : i32
    return %c0_i32, %c0_i32_0 : i32, i32
  }
  func.func @transform_4(%arg0: i32) -> (i32, i32) {
    %c0_i32 = arith.constant 0 : i32
    %c0_i32_0 = arith.constant 0 : i32
    return %arg0, %c0_i32 : i32, i32
  }
}

</mosaic_0001>

<bundles_post_ra>
// kernel: forward.2
= control target key start
LH: loop header
LB: loop body
LE: loop exit
PB: predicated region body
PF: predicated region fallthrough
CT: control target
= control target key end

     0   :  { %s440_s15 = smov 0   ;;  %s567_s0 = inlined_call_operand.vmem [shape: f32[6,3,256], index: 0, kind: input, shape index: {}]   ;;  %s568_s1 = inlined_call_operand.vmem [shape: f32[4,3], index: 1, kind: input, shape index: {}]   ;;  %s569_s2 = inlined_call_operand.vmem [shape: f32[4,1], index: 2, kind: input, shape index: {}]   ;;  %s570_s3 = inlined_call_operand.vmem [shape: f32[256,64], index: 3, kind: input, shape index: {}]   ;;  %s571_s4 = inlined_call_operand.vmem [shape: f32[6,4,64], index: 4, kind: output, shape index: {}]  }
   0x1 LB: > { %s377_s16 = sadd.s32 4294967295, %s410_s15   ;;  %p381_p0 = scmp.ge.s32.totalorder %s410_s15, 1  ;;  %s410_s15 = sphi %s440_s15, %s14_s15  }
   0x2   : > { %p162_p1 = scmp.lt.s32.totalorder %s410_s15, 7 }
   0x4   : > { %p163_p2 = pnand %p381_p0, %p162_p1 }
   0x5   : > { %p187_p3 = scmp.lt.s32.totalorder (!%p163_p2), %s377_s16, 5 }
   0x6   : > { %166 = sbr.rel (%p163_p2) target bundleno = 276 (0x114), region = 36 }
   0xb   : > { %v197_v0 = vld [vmem:[%s568_s1] sm:$0xf]  ;;  %v265_v1 = vld [vmem:[%s570_s3 + $0x78] sm:$0xff]  ;;  %v412_v2 = vmov 0   ;;  %v413_v3 = vmov 2   ;;  %v264_v5 = vld [vmem:[%s570_s3 + $0x70] sm:$0xff] }
   0xc   : > { %399 = vset.pattern.permute.xlu0 %v412_v2  ;;  %401 = vset.pattern.permute.xlu1 %v413_v3  ;;  %v281_v4 = vld [vmem:[%s570_s3 + $0xf8] sm:$0xff]  ;;  %v280_v6 = vld [vmem:[%s570_s3 + $0xf0] sm:$0xff]  ;;  %v263_v7 = vld [vmem:[%s570_s3 + $0x68] sm:$0xff]  ;;  %v414_v14 = vmov 1   ;;  %s573_s16 = smov (!%p187_p3, %s377_s16), 5  ;;  %vm322_vm0 = vcmask 519168  }
   0xd   : > { %201 = vperm.xlu0 %399, %v197_v0   ;;  %228 = vperm.xlu1 %401, %v197_v0   ;;  %v279_v8 = vld [vmem:[%s570_s3 + $0xe8] sm:$0xff]  ;;  %v262_v9 = vld [vmem:[%s570_s3 + $0x60] sm:$0xff]  ;;  %v261_v12 = vld [vmem:[%s570_s3 + $0x58] sm:$0xff]  ;;  %s387_s11 = sshll.u32 %s573_s16, 3  ;;  %s384_s17 = sshll.u32 %s573_s16, 2 }
   0xe   : > { %282 = vmatpush.msra.mxu0 %v265_v1  ;;  %302 = vmatpush.msra.mxu1 %v281_v4  ;;  %v278_v10 = vld [vmem:[%s570_s3 + $0xe0] sm:$0xff]  ;;  %v277_v13 = vld [vmem:[%s570_s3 + $0xd8] sm:$0xff]  ;;  %v260_v15 = vld [vmem:[%s570_s3 + $0x50] sm:$0xff]  ;;  %s191_s14 = scalar_lea.vmem %s567_s0, %s387_s11  ;;  %s195_s20 = scalar_lea.vmem %s571_s4, %s384_s17 }
   0xf   : > { %v198_v11 = vld [vmem:[%s569_s2] sm:$0xf]  ;;  %v276_v16 = vld [vmem:[%s570_s3 + $0xd0] sm:$0xff]  ;;  %v259_v17 = vld [vmem:[%s570_s3 + $0x48] sm:$0xff] }
  0x10   : > { %283 = vmatpush.msra.mxu0 %v264_v5  ;;  %303 = vmatpush.msra.mxu1 %v280_v6  ;;  %v275_v18 = vld [vmem:[%s570_s3 + $0xc8] sm:$0xff]  ;;  %v258_v19 = vld [vmem:[%s570_s3 + $0x40] sm:$0xff]  ;;  %v257_v21 = vld [vmem:[%s570_s3 + $0x38] sm:$0xff] }
  0x11   : > { %v274_v20 = vld [vmem:[%s570_s3 + $0xc0] sm:$0xff]  ;;  %v273_v22 = vld [vmem:[%s570_s3 + $0xb8] sm:$0xff]  ;;  %v256_v23 = vld [vmem:[%s570_s3 + $0x30] sm:$0xff] }
  0x12   : > { %284 = vmatpush.msra.mxu0 %v263_v7  ;;  %304 = vmatpush.msra.mxu1 %v279_v8  ;;  %v272_v24 = vld [vmem:[%s570_s3 + $0xb0] sm:$0xff]  ;;  %v255_v25 = vld [vmem:[%s570_s3 + $0x28] sm:$0xff]  ;;  %v254_v27 = vld [vmem:[%s570_s3 + $0x20] sm:$0xff] }
  0x13   : > { %v271_v26 = vld [vmem:[%s570_s3 + $0xa8] sm:$0xff]  ;;  %v270_v28 = vld [vmem:[%s570_s3 + $0xa0] sm:$0xff]  ;;  %v253_v29 = vld [vmem:[%s570_s3 + $0x18] sm:$0xff] }
  0x14   : > { %285 = vmatpush.msra.mxu0 %v262_v9  ;;  %305 = vmatpush.msra.mxu1 %v278_v10  ;;  %v269_v30 = vld [vmem:[%s570_s3 + $0x98] sm:$0xff]  ;;  %v252_v31 = vld [vmem:[%s570_s3 + $0x10] sm:$0xff]  ;;  %v251_v33 = vld [vmem:[%s570_s3 + $0x8] sm:$0xff] }
  0x15   : > { %400 = vset.pattern.permute.xlu0 %v414_v14  ;;  %402 = vset.pattern.permute.xlu1 %v412_v2  ;;  %v268_v32 = vld [vmem:[%s570_s3 + $0x90] sm:$0xff]  ;;  %v267_v34 = vld [vmem:[%s570_s3 + $0x88] sm:$0xff]  ;;  %v250_v35 = vld [vmem:[%s570_s3] sm:$0xff] }
  0x16   : > { %214 = vperm.xlu0 %400, %v197_v0   ;;  %243 = vperm.xlu1 %402, %v198_v11   ;;  %v266_v36 = vld [vmem:[%s570_s3 + $0x80] sm:$0xff] }
  0x17   : > { %286 = vmatpush.msra.mxu0 %v261_v12  ;;  %306 = vmatpush.msra.mxu1 %v277_v13  ;;  %v196_v37 = vld [vmem:[%s191_s14] sm:$0x77] }
  0x18   : > { %v205_v39 = vperm.slane %v196_v37, 0  ;;  %v206_v40 = vperm.slane %v196_v37, 4  ;;  %v217_v41 = vperm.slane %v196_v37, 1  ;;  %v218_v42 = vperm.slane %v196_v37, 5 }
  0x19   : > { %287 = vmatpush.msra.mxu0 %v260_v15  ;;  %307 = vmatpush.msra.mxu1 %v276_v16  ;;  %v231_v44 = vperm.slane %v196_v37, 2  ;;  %v232_v45 = vperm.slane %v196_v37, 6 }
  0x1a   : > { %v209_v46 = vperm.slane %v205_v39, 0  ;;  %v210_v47 = vperm.slane %v206_v40, 0  ;;  %v221_v48 = vperm.slane %v217_v41, 1  ;;  %v222_v49 = vperm.slane %v218_v42, 1 }
  0x1b   : > { %288 = vmatpush.msra.mxu0 %v259_v17  ;;  %308 = vmatpush.msra.mxu1 %v275_v18  ;;  %v235_v50 = vperm.slane %v231_v44, 2  ;;  %v236_v51 = vperm.slane %v232_v45, 2 }
  0x1d   : > { %289 = vmatpush.msra.mxu0 %v258_v19  ;;  %309 = vmatpush.msra.mxu1 %v274_v20 }
  0x1e   : > { %403 = vset.pattern.permute.xlu0 %v412_v2 }
  0x1f   : > { %290 = vmatpush.msra.mxu0 %v257_v21  ;;  %310 = vmatpush.msra.mxu1 %v273_v22 }
  0x21   : > { %291 = vmatpush.msra.mxu0 %v256_v23  ;;  %311 = vmatpush.msra.mxu1 %v272_v24 }
  0x23   : > { %292 = vmatpush.msra.mxu0 %v255_v25  ;;  %312 = vmatpush.msra.mxu1 %v271_v26 }
  0x25   : > { %293 = vmatpush.msra.mxu0 %v254_v27  ;;  %313 = vmatpush.msra.mxu1 %v270_v28 }
  0x27   : > { %294 = vmatpush.msra.mxu0 %v253_v29  ;;  %314 = vmatpush.msra.mxu1 %v269_v30 }
  0x29   : > { %295 = vmatpush.msra.mxu0 %v252_v31  ;;  %315 = vmatpush.msra.mxu1 %v268_v32 }
  0x2b   : > { %296 = vmatpush.msra.mxu0 %v251_v33  ;;  %316 = vmatpush.msra.mxu1 %v267_v34 }
  0x2d   : > { %297 = vmatpush.msra.mxu0 %v250_v35  ;;  %317 = vmatpush.msra.mxu1 %v266_v36 }
  0x7f   : > { %v202_v38 = vpop.permute.xlu0 %201  ;;  %v229_v43 = vpop.permute.xlu1 %228 }
  0x80   : > { %v211_v53 = vmul.f32 %v209_v46, %v202_v38  ;;  %v212_v54 = vmul.f32 %v210_v47, %v202_v38  ;;  %v237_v57 = vmul.f32 %v235_v50, %v229_v43  ;;  %v238_v58 = vmul.f32 %v236_v51, %v229_v43 }
  0x88   : > { %v215_v52 = vpop.permute.xlu0 %214  ;;  %v244_v61 = vpop.permute.xlu1 %243 }
  0x89   : > { %v223_v55 = vmul.f32 %v221_v48, %v215_v52  ;;  %v224_v56 = vmul.f32 %v222_v49, %v215_v52 }
  0x8b   : > { %v225_v59 = vadd.f32 %v223_v55, %v211_v53  ;;  %v226_v60 = vadd.f32 %v224_v56, %v212_v54 }
  0x8d   : > { %v239_v62 = vadd.f32 %v237_v57, %v225_v59  ;;  %v240_v63 = vadd.f32 %v238_v58, %v226_v60 }
  0x8f   : > { %v246_v0 = vadd.f32 %v244_v61, %v239_v62  ;;  %v247_v1 = vadd.f32 %v244_v61, %v240_v63 }
  0x91   : > { %v248_v2 = vmax.f32 %v246_v0, 0.0  ;;  %v249_v3 = vmax.f32 %v247_v1, 0.0 }
  0x93   : > { %298 = vmatmul.f32.vlgmr.msra.gmra.mxu0 %v248_v2  ;;  %318 = vmatmul.f32.vlgmr.msra.gmra.mxu1 %v249_v3 }
 0x110   : > { %v299_v4 = vpop.f32.mrf.mxu0  ;;  %v319_v5 = vpop.f32.mrf.mxu1 }
 0x111   : > { %v320_v6 = vadd.f32 %v319_v5, %v299_v4 }
 0x113   : > { %323 = vst.msk [vmem:[%s195_s20] sm:$0xf] %vm322_vm0, %v320_v6 }
 0x114 PF: > { %s14_s15 = sadd.s32 1, %s410_s15  }
 0x115   : > { %p11_p4 = scmp.ge.s32.totalorder %s14_s15, 8  }
 0x117   :  { %13 = sbr.rel (!%p11_p4) target bundleno = 1 (0x1), region = 66 }

// kernel: forward.3
= control target key start
LH: loop header
LB: loop body
LE: loop exit
PB: predicated region body
PF: predicated region fallthrough
CT: control target
= control target key end

     0   :  { %vm125_vm0 = vcmask 261120   ;;  %s278_s2 = inlined_call_operand.vmem [shape: bf16[128,128], index: 2, kind: input, shape index: {}]   ;;  %s279_s3 = inlined_call_operand.vmem [shape: f32[1,128], index: 3, kind: input, shape index: {}]   ;;  %s280_s0 = inlined_call_operand.vmem [shape: bf16[32,128], index: 0, kind: input, shape index: {}]   ;;  %s281_s1 = inlined_call_operand.vmem [shape: f32[1,8,32], index: 1, kind: input, shape index: {}]   ;;  %s282_s4 = inlined_call_operand.vmem [shape: f32[8,128], index: 4, kind: output, shape index: {}]  }
   0x1   :  { %v204_v0 = vld [vmem:[%s278_s2 + $0x38] sm:$0xff]  ;;  %v203_v1 = vld [vmem:[%s278_s2 + $0x30] sm:$0xff]  ;;  %v202_v2 = vld [vmem:[%s278_s2 + $0x28] sm:$0xff] }
   0x2   :  { %205 = vmatpush.bf16.msra.mxu2 %v204_v0  ;;  %101 = vmatpush.bf16.msra.mxu0 %v204_v0  ;;  %v201_v3 = vld [vmem:[%s278_s2 + $0x20] sm:$0xff]  ;;  %v200_v4 = vld [vmem:[%s278_s2 + $0x18] sm:$0xff]  ;;  %v199_v5 = vld [vmem:[%s278_s2 + $0x10] sm:$0xff] }
   0x3   :  { %v198_v6 = vld [vmem:[%s278_s2 + $0x8] sm:$0xff]  ;;  %v197_v7 = vld [vmem:[%s278_s2] sm:$0xff] }
   0x4   :  { %v196_v8 = vld [vmem:[%s280_s0 + $0x8] sm:$0xff]  ;;  %v195_v9 = vld [vmem:[%s280_s0] sm:$0xff] }
   0x5   :  { %v213_v12 = vld [vmem:[%s279_s3] ss:$0 sm:$0xff] }
   0x6   :  { %206 = vmatpush.bf16.msra.mxu2 %v203_v1  ;;  %102 = vmatpush.bf16.msra.mxu0 %v203_v1  ;;  %v124_v23 = vld [vmem:[%s281_s1] sm:$0xff] }
   0xa   :  { %207 = vmatpush.bf16.msra.mxu2 %v202_v2  ;;  %103 = vmatpush.bf16.msra.mxu0 %v202_v2 }
   0xe   :  { %208 = vmatpush.bf16.msra.mxu2 %v201_v3  ;;  %104 = vmatpush.bf16.msra.mxu0 %v201_v3 }
  0x12   :  { %209 = vmatpush.bf16.msra.mxu2 %v200_v4  ;;  %105 = vmatpush.bf16.msra.mxu0 %v200_v4 }
  0x16   :  { %210 = vmatpush.bf16.msra.mxu2 %v199_v5  ;;  %106 = vmatpush.bf16.msra.mxu0 %v199_v5 }
  0x1a   :  { %211 = vmatpush.bf16.msra.mxu2 %v198_v6  ;;  %107 = vmatpush.bf16.msra.mxu0 %v198_v6 }
  0x1e   :  { %212 = vmatpush.bf16.msra.mxu2 %v197_v7  ;;  %108 = vmatpush.bf16.msra.mxu0 %v197_v7 }
  0x21   :  { %114 = vmatmul.bf16.vlgmr.msra.gmra.mxu2 %v196_v8  ;;  %109 = vmatmul.bf16.vlgmr.msra.gmra.mxu0 %v195_v9 }
  0x9e   :  { %v110_v10 = vpop.f32.mrf.mxu0 }
  0x9f   :  { %v111_v19 = vadd.f32 %v213_v12, %v110_v10 }
  0xa1   :  { %v120_v22 = vmax.f32 %v111_v19, 0.0 }
  0xa4   :  { %v115_v11 = vpop.f32.mrf.mxu2 }
  0xa5   :  { %v116_v15 = vadd.f32 %v213_v12, %v115_v11 }
  0xa6   :  { %v112_v13 = vpop.f32.mrf.mxu0 }
  0xa7   :  { %v113_v17 = vadd.f32 %v213_v12, %v112_v13  ;;  %v122_v20 = vmax.f32 %v116_v15, 0.0 }
  0xa9   :  { %v121_v21 = vmax.f32 %v113_v17, 0.0 }
  0xac   :  { %v117_v14 = vpop.f32.mrf.mxu2 }
  0xad   :  { %v118_v16 = vadd.f32 %v213_v12, %v117_v14 }
  0xaf   :  { %v123_v18 = vmax.f32 %v118_v16, 0.0 }
  0xb1   :  { %141 = vmatpush.msra.mxu1 %v123_v18 }
  0xb3   :  { %142 = vmatpush.msra.mxu1 %v122_v20 }
  0xb5   :  { %143 = vmatpush.msra.mxu1 %v121_v21 }
  0xb7   :  { %144 = vmatpush.msra.mxu1 %v120_v22 }
  0xb8   :  { %194 = vmatmul.msk.f32.vlgmr.msra.gmra.mxu1 %vm125_vm0, %v124_v23 }
 0x135   :  { %v146_v24 = vpop.f32.mrf.mxu1 }
 0x136   :  { %149 = vst [vmem:[%s282_s4] sm:$0xff] %v146_v24 }

</bundles_post_ra>
